<compile_context>
chip_gen: v6e
topology: v6e:2x2x1
jax: 0.10.0
libtpu: 0.0.40
codegen_flags: <defaults>
</compile_context>

<pallas_src>
import functools

import jax
import jax.numpy as jnp
from jax.experimental import pallas as pl
from jax.experimental.pallas import tpu as pltpu

IN_C, OUT_C, KH, KW = 3, 6, 3, 3
C_PAD = 8    # input channels padded to a full sublane tile
OC_PAD = 8   # output channels padded to a full sublane tile


def _conv_kernel(w_ref, b_ref, x_ref, o_ref, *, width):
    """3x3 valid conv as 9 shifted (8,8)@(8,NHW_pad) MXU matmuls.

    w_ref: VMEM (KH*KW, OC_PAD, C_PAD)  per-tap weight blocks, tap order (kh, kw)
    b_ref: VMEM (OC_PAD, 1)             bias
    x_ref: VMEM (C_PAD, NHW_pad)        channels on sublanes, flat (n, h, w) on lanes
    o_ref: VMEM (OC_PAD, NHW_pad)       lane-dense output slab
    """
    nhw_pad = x_ref.shape[1]

    # Load the slab once; all shifted views come from this value.
    x = x_ref[...]

    # 9-matmul accumulation: only one shifted slab plus the small f32
    # accumulator is live at a time (no (72, NHW) patch matrix).
    acc = jnp.zeros(o_ref.shape, jnp.float32)
    tap = 0
    for kh in range(KH):
        for kw in range(KW):
            shift = kh * width + kw
            if shift == 0:
                xs = x
            else:
                # xs[:, p] = x[:, p + shift]; wrap-around lands only in the
                # zero-padded lanes that the wrapper discards.
                xs = pltpu.roll(x, nhw_pad - shift, 1)
            acc = acc + jnp.dot(w_ref[tap], xs,
                                preferred_element_type=jnp.float32)
            tap += 1

    o_ref[...] = (acc + b_ref[...]).astype(o_ref.dtype)


def conv2d_pallas(x, weight, bias):
    """x: (N, 3, H, W); weight: (6, 3, 3, 3); bias: (6,). Returns (N, 6, H-2, W-2)."""
    N, C, H, W = x.shape
    OC = weight.shape[0]
    HO, WO = H - KH + 1, W - KW + 1
    NHW = N * H * W

    # Lane padding: keeps every shifted read for a *valid* output lane inside
    # the real data and pushes roll wrap-around garbage into discarded lanes.
    max_shift = (KH - 1) * W + (KW - 1)
    nhw_pad = NHW + max(int(pl.cdiv(max_shift, 128)), 1) * 128

    # Lane-dense input slab, channel axis padded to 8 sublanes so every tap is
    # a full-sublane block (no cross-sublane repacking in-kernel).
    x_flat = x.astype(jnp.float32).transpose(1, 0, 2, 3).reshape(C, NHW)
    x_slab = jnp.zeros((C_PAD, nhw_pad), jnp.float32).at[:C, :NHW].set(x_flat)

    # Per-tap weight blocks (kh*KW + kw, OC_PAD, C_PAD); zero padding on both
    # channel axes makes the padded rows/cols contribute exactly 0.
    w_taps = weight.astype(jnp.float32).transpose(2, 3, 0, 1).reshape(KH * KW, OC, C)
    w_pad = jnp.zeros((KH * KW, OC_PAD, C_PAD), jnp.float32).at[:, :OC, :C].set(w_taps)
    b_pad = jnp.zeros((OC_PAD, 1), jnp.float32).at[:OC, 0].set(bias.astype(jnp.float32))

    # Whole (~20 KiB) problem in a single ungridded call: one step avoids the
    # ~0.35 us/step pipeline overhead that would dominate at this size.
    # TODO(synk): for production N*H*W, grid over the lane axis with VMEM-sized
    # tiles (<= ~4 MiB/buffer for v5e's 16 MiB scoped VMEM, well under the
    # 32 MiB scoped limit on v7x's 64 MiB VMEM; BlockSpec double-buffers each
    # operand), mark that axis "parallel" for megacore, and consider bf16
    # operands with f32 accumulation if the tolerance can be loosened.
    out_slab = pl.pallas_call(
        functools.partial(_conv_kernel, width=W),
        out_shape=jax.ShapeDtypeStruct((OC_PAD, nhw_pad), jnp.float32),
        in_specs=[
            pl.BlockSpec(memory_space=pltpu.MemorySpace.VMEM),  # weight taps
            pl.BlockSpec(memory_space=pltpu.MemorySpace.VMEM),  # bias
            pl.BlockSpec(memory_space=pltpu.MemorySpace.VMEM),  # input slab
        ],
        out_specs=pl.BlockSpec(memory_space=pltpu.MemorySpace.VMEM),
    )(w_pad, b_pad, x_slab)

    # Wrapper-side layout plumbing back to NCHW: keep only real channels and
    # the valid (oh < HO, ow < WO) lane positions.
    out = out_slab[:OC, :NHW].reshape(OC, N, H, W)[:, :, :HO, :WO]
    return out.transpose(1, 0, 2, 3).astype(x.dtype)


if __name__ == "__main__":
    key = jax.random.PRNGKey(0)
    kx, kw_key, kb_key = jax.random.split(key, 3)

    # Small input consistent with the module: batch=2, channels=3, spatial=16.
    x = jax.random.normal(kx, (2, IN_C, 16, 16), dtype=jnp.float32)

    # Deterministic parameter init, matching PyTorch Conv2d default
    # (kaiming-uniform bound = 1/sqrt(fan_in), fan_in = C*KH*KW = 27).
    fan_in = IN_C * KH * KW
    bound = 1.0 / (fan_in ** 0.5)
    weight = jax.random.uniform(kw_key, (OUT_C, IN_C, KH, KW), jnp.float32,
                                minval=-bound, maxval=bound)
    bias = jax.random.uniform(kb_key, (OUT_C,), jnp.float32,
                              minval=-bound, maxval=bound)

    out = jax.block_until_ready(conv2d_pallas(x, weight, bias))

    # Reference check against XLA conv (same NCHW / OIHW convention as PyTorch).
    ref = jax.lax.conv_general_dilated(
        x, weight, window_strides=(1, 1), padding="VALID",
        dimension_numbers=("NCHW", "OIHW", "NCHW"),
    ) + bias[None, :, None, None]

    assert out.shape == (2, OUT_C, 14, 14), out.shape
    assert jnp.allclose(out, ref, atol=1e-5, rtol=1e-5), "mismatch vs reference conv"

    print("KERNEL_OK")
</pallas_src>

<mosaic_0001>
module attributes {stable_mosaic.version = 11 : i64} {
  func.func @_conv_kernel(%arg0: memref<9x8x8xf32, #tpu.memory_space<vmem>>, %arg1: memref<8x1xf32, #tpu.memory_space<vmem>>, %arg2: memref<8x640xf32, #tpu.memory_space<vmem>>, %arg3: memref<8x640xf32, #tpu.memory_space<vmem>>) attributes {dimension_semantics = [], scalar_prefetch = 0 : i64, scratch_operands = 0 : i64, tpu.core_type = #tpu.core_type<tc>} {
    %c0 = arith.constant 0 : index
    %c0_0 = arith.constant 0 : index
    %0 = vector.load %arg2[%c0, %c0_0] : memref<8x640xf32, #tpu.memory_space<vmem>>, vector<8x640xf32>
    %cst = arith.constant 0.000000e+00 : f32
    %1 = vector.broadcast %cst : f32 to vector<8x640xf32>
    %c0_1 = arith.constant 0 : index
    %c0_2 = arith.constant 0 : index
    %c0_3 = arith.constant 0 : index
    %2 = vector.load %arg0[%c0_1, %c0_2, %c0_3] : memref<9x8x8xf32, #tpu.memory_space<vmem>>, vector<1x8x8xf32>
    %3 = vector.shape_cast %2 : vector<1x8x8xf32> to vector<8x8xf32>
    %cst_4 = arith.constant dense<0.000000e+00> : vector<8x640xf32>
    %4 = tpu.matmul %3, %0, %cst_4 {dimension_numbers = #tpu.dot_dimension_numbers<[1], [0], [0], [1], [0, 0, 1, 1], [], []>} : vector<8x8xf32>, vector<8x640xf32>, vector<8x640xf32> -> vector<8x640xf32>
    %5 = arith.addf %1, %4 : vector<8x640xf32>
    %c639_i32 = arith.constant 639 : i32
    %6 = tpu.dynamic_rotate %0 by %c639_i32 dim 1 : vector<8x640xf32>, i32 -> vector<8x640xf32>
    %c1 = arith.constant 1 : index
    %c0_5 = arith.constant 0 : index
    %c0_6 = arith.constant 0 : index
    %7 = vector.load %arg0[%c1, %c0_5, %c0_6] : memref<9x8x8xf32, #tpu.memory_space<vmem>>, vector<1x8x8xf32>
    %8 = vector.shape_cast %7 : vector<1x8x8xf32> to vector<8x8xf32>
    %cst_7 = arith.constant dense<0.000000e+00> : vector<8x640xf32>
    %9 = tpu.matmul %8, %6, %cst_7 {dimension_numbers = #tpu.dot_dimension_numbers<[1], [0], [0], [1], [0, 0, 1, 1], [], []>} : vector<8x8xf32>, vector<8x640xf32>, vector<8x640xf32> -> vector<8x640xf32>
    %10 = arith.addf %5, %9 : vector<8x640xf32>
    %c638_i32 = arith.constant 638 : i32
    %11 = tpu.dynamic_rotate %0 by %c638_i32 dim 1 : vector<8x640xf32>, i32 -> vector<8x640xf32>
    %c2 = arith.constant 2 : index
    %c0_8 = arith.constant 0 : index
    %c0_9 = arith.constant 0 : index
    %12 = vector.load %arg0[%c2, %c0_8, %c0_9] : memref<9x8x8xf32, #tpu.memory_space<vmem>>, vector<1x8x8xf32>
    %13 = vector.shape_cast %12 : vector<1x8x8xf32> to vector<8x8xf32>
    %cst_10 = arith.constant dense<0.000000e+00> : vector<8x640xf32>
    %14 = tpu.matmul %13, %11, %cst_10 {dimension_numbers = #tpu.dot_dimension_numbers<[1], [0], [0], [1], [0, 0, 1, 1], [], []>} : vector<8x8xf32>, vector<8x640xf32>, vector<8x640xf32> -> vector<8x640xf32>
    %15 = arith.addf %10, %14 : vector<8x640xf32>
    %c624_i32 = arith.constant 624 : i32
    %16 = tpu.dynamic_rotate %0 by %c624_i32 dim 1 : vector<8x640xf32>, i32 -> vector<8x640xf32>
    %c3 = arith.constant 3 : index
    %c0_11 = arith.constant 0 : index
    %c0_12 = arith.constant 0 : index
    %17 = vector.load %arg0[%c3, %c0_11, %c0_12] : memref<9x8x8xf32, #tpu.memory_space<vmem>>, vector<1x8x8xf32>
    %18 = vector.shape_cast %17 : vector<1x8x8xf32> to vector<8x8xf32>
    %cst_13 = arith.constant dense<0.000000e+00> : vector<8x640xf32>
    %19 = tpu.matmul %18, %16, %cst_13 {dimension_numbers = #tpu.dot_dimension_numbers<[1], [0], [0], [1], [0, 0, 1, 1], [], []>} : vector<8x8xf32>, vector<8x640xf32>, vector<8x640xf32> -> vector<8x640xf32>
    %20 = arith.addf %15, %19 : vector<8x640xf32>
    %c623_i32 = arith.constant 623 : i32
    %21 = tpu.dynamic_rotate %0 by %c623_i32 dim 1 : vector<8x640xf32>, i32 -> vector<8x640xf32>
    %c4 = arith.constant 4 : index
    %c0_14 = arith.constant 0 : index
    %c0_15 = arith.constant 0 : index
    %22 = vector.load %arg0[%c4, %c0_14, %c0_15] : memref<9x8x8xf32, #tpu.memory_space<vmem>>, vector<1x8x8xf32>
    %23 = vector.shape_cast %22 : vector<1x8x8xf32> to vector<8x8xf32>
    %cst_16 = arith.constant dense<0.000000e+00> : vector<8x640xf32>
    %24 = tpu.matmul %23, %21, %cst_16 {dimension_numbers = #tpu.dot_dimension_numbers<[1], [0], [0], [1], [0, 0, 1, 1], [], []>} : vector<8x8xf32>, vector<8x640xf32>, vector<8x640xf32> -> vector<8x640xf32>
    %25 = arith.addf %20, %24 : vector<8x640xf32>
    %c622_i32 = arith.constant 622 : i32
    %26 = tpu.dynamic_rotate %0 by %c622_i32 dim 1 : vector<8x640xf32>, i32 -> vector<8x640xf32>
    %c5 = arith.constant 5 : index
    %c0_17 = arith.constant 0 : index
    %c0_18 = arith.constant 0 : index
    %27 = vector.load %arg0[%c5, %c0_17, %c0_18] : memref<9x8x8xf32, #tpu.memory_space<vmem>>, vector<1x8x8xf32>
    %28 = vector.shape_cast %27 : vector<1x8x8xf32> to vector<8x8xf32>
    %cst_19 = arith.constant dense<0.000000e+00> : vector<8x640xf32>
    %29 = tpu.matmul %28, %26, %cst_19 {dimension_numbers = #tpu.dot_dimension_numbers<[1], [0], [0], [1], [0, 0, 1, 1], [], []>} : vector<8x8xf32>, vector<8x640xf32>, vector<8x640xf32> -> vector<8x640xf32>
    %30 = arith.addf %25, %29 : vector<8x640xf32>
    %c608_i32 = arith.constant 608 : i32
    %31 = tpu.dynamic_rotate %0 by %c608_i32 dim 1 : vector<8x640xf32>, i32 -> vector<8x640xf32>
    %c6 = arith.constant 6 : index
    %c0_20 = arith.constant 0 : index
    %c0_21 = arith.constant 0 : index
    %32 = vector.load %arg0[%c6, %c0_20, %c0_21] : memref<9x8x8xf32, #tpu.memory_space<vmem>>, vector<1x8x8xf32>
    %33 = vector.shape_cast %32 : vector<1x8x8xf32> to vector<8x8xf32>
    %cst_22 = arith.constant dense<0.000000e+00> : vector<8x640xf32>
    %34 = tpu.matmul %33, %31, %cst_22 {dimension_numbers = #tpu.dot_dimension_numbers<[1], [0], [0], [1], [0, 0, 1, 1], [], []>} : vector<8x8xf32>, vector<8x640xf32>, vector<8x640xf32> -> vector<8x640xf32>
    %35 = arith.addf %30, %34 : vector<8x640xf32>
    %c607_i32 = arith.constant 607 : i32
    %36 = tpu.dynamic_rotate %0 by %c607_i32 dim 1 : vector<8x640xf32>, i32 -> vector<8x640xf32>
    %c7 = arith.constant 7 : index
    %c0_23 = arith.constant 0 : index
    %c0_24 = arith.constant 0 : index
    %37 = vector.load %arg0[%c7, %c0_23, %c0_24] : memref<9x8x8xf32, #tpu.memory_space<vmem>>, vector<1x8x8xf32>
    %38 = vector.shape_cast %37 : vector<1x8x8xf32> to vector<8x8xf32>
    %cst_25 = arith.constant dense<0.000000e+00> : vector<8x640xf32>
    %39 = tpu.matmul %38, %36, %cst_25 {dimension_numbers = #tpu.dot_dimension_numbers<[1], [0], [0], [1], [0, 0, 1, 1], [], []>} : vector<8x8xf32>, vector<8x640xf32>, vector<8x640xf32> -> vector<8x640xf32>
    %40 = arith.addf %35, %39 : vector<8x640xf32>
    %c606_i32 = arith.constant 606 : i32
    %41 = tpu.dynamic_rotate %0 by %c606_i32 dim 1 : vector<8x640xf32>, i32 -> vector<8x640xf32>
    %c8 = arith.constant 8 : index
    %c0_26 = arith.constant 0 : index
    %c0_27 = arith.constant 0 : index
    %42 = vector.load %arg0[%c8, %c0_26, %c0_27] : memref<9x8x8xf32, #tpu.memory_space<vmem>>, vector<1x8x8xf32>
    %43 = vector.shape_cast %42 : vector<1x8x8xf32> to vector<8x8xf32>
    %cst_28 = arith.constant dense<0.000000e+00> : vector<8x640xf32>
    %44 = tpu.matmul %43, %41, %cst_28 {dimension_numbers = #tpu.dot_dimension_numbers<[1], [0], [0], [1], [0, 0, 1, 1], [], []>} : vector<8x8xf32>, vector<8x640xf32>, vector<8x640xf32> -> vector<8x640xf32>
    %45 = arith.addf %40, %44 : vector<8x640xf32>
    %c0_29 = arith.constant 0 : index
    %c0_30 = arith.constant 0 : index
    %46 = vector.load %arg1[%c0_29, %c0_30] : memref<8x1xf32, #tpu.memory_space<vmem>>, vector<8x1xf32>
    %47 = vector.broadcast %46 : vector<8x1xf32> to vector<8x640xf32>
    %48 = arith.addf %45, %47 : vector<8x640xf32>
    %c0_31 = arith.constant 0 : index
    %c0_32 = arith.constant 0 : index
    %49 = vector.load %arg3[%c0_31, %c0_32] : memref<8x640xf32, #tpu.memory_space<vmem>>, vector<8x640xf32>
    tpu.vector_store %arg3[%c0_31, %c0_32], %48 {strides = array<i32>} : memref<8x640xf32, #tpu.memory_space<vmem>>, vector<8x640xf32>,
    return
  }
}

</mosaic_0001>

<bundles_post_ra>
// kernel: tpu_custom_call.1
= control target key start
LH: loop header
LB: loop body
LE: loop exit
PB: predicated region body
PF: predicated region fallthrough
CT: control target
= control target key end

     0   :  { %s2301_s16 = smov 127   ;;  %v2302_v4 = vmov 0.0   ;;  %s2598_s0 = inlined_call_operand.vmem [shape: f32[9,8,8], index: 0, kind: input, shape index: {}]   ;;  %s2599_s1 = inlined_call_operand.vmem [shape: f32[8,1], index: 1, kind: input, shape index: {}]   ;;  %s2600_s2 = inlined_call_operand.vmem [shape: f32[8,640], index: 2, kind: input, shape index: {}]   ;;  %s2601_s3 = inlined_call_operand.hbm [shape: f32[8,640], index: 3, kind: output, shape index: {}]  }
   0x1   :  { %v2336_v0 = vld [vmem:[%s2600_s2 + $0x8] sm:$0xff]  ;;  %v2341_v1 = vld [vmem:[%s2600_s2] sm:$0xff]  ;;  %v2348_v2 = vld [vmem:[%s2600_s2 + $0x10] sm:$0xff]  ;;  %109 = vmatprep.mubr.f32.mxu0 %v2302_v4  ;;  %180 = vmatprep.mubr.f32.mxu1 %v2302_v4 }
   0x2   :  { %23 = vrot.lane.b32.xlu0 %v2336_v0, %s2301_s16  ;;  %21 = vrot.lane.b32.xlu1 %v2341_v1, %s2301_s16  ;;  %v2353_v3 = vld [vmem:[%s2600_s2 + $0x18] sm:$0xff] }
   0x3   :  { %8 = vsyncpa [#allocation3], 0  ;;  %v2362_v5 = vld [vmem:[%s2600_s2 + $0x20] sm:$0xff]  ;;  %s2303_s23 = smov 126   ;;  %s2304_s24 = smov 112   ;;  %v2309_v6 = vmov 0   ;;  %v31_v8 = vlaneseq }
   0x4   :  { %s2305_s2 = smov 111   ;;  %s2306_s25 = smov 110   ;;  %2278 = vset.pattern.permute.xlu0 %v2309_v6  ;;  %v2138_v7 = vld [vmem:[%s2599_s1] sm:$0xff]  ;;  %v2168_v15 = vld [vmem:[%s2598_s0 + $0x8] sm:$0xff]  ;;  %vm41_vm1 = vcmask 64512   ;;  %vm2311_vm2 = vmmov 0  }
   0x5   :  { %s2307_s26 = smov 96   ;;  %s2308_s27 = smov 95   ;;  %v2403_v9 = vand.u32 127, %v31_v8  ;;  %v20_v25 = vld [vmem:[%s2598_s0] sm:$0xff]  ;;  %v2175_v30 = vld [vmem:[%s2598_s0 + $0x10] sm:$0xff]  ;;  %v2179_v39 = vld [vmem:[%s2598_s0 + $0x18] sm:$0xff] }
   0x6   :  { %25 = vrot.lane.b32.xlu0 %v2348_v2, %s2301_s16  ;;  %27 = vrot.lane.b32.xlu1 %v2353_v3, %s2301_s16  ;;  %s2310_s28 = smov 94   ;;  %v2183_v49 = vld [vmem:[%s2598_s0 + $0x20] sm:$0xff]  ;;  %v2187_v60 = vld [vmem:[%s2598_s0 + $0x28] sm:$0xff] }
   0x7   :  { %vm33_vm0 = vcmp.lt.s32.totalorder %v2403_v9, 127  ;;  %vm482_vm3 = vcmp.lt.s32.totalorder %v2403_v9, 126  ;;  %vm720_vm4 = vcmp.lt.s32.totalorder %v2403_v9, 112  ;;  %vm958_vm5 = vcmp.lt.s32.totalorder %v2403_v9, 111  ;;  %v2191_v8 = vld [vmem:[%s2598_s0 + $0x30] sm:$0xff] }
   0x8   :  { %vm1196_vm6 = vcmp.lt.s32.totalorder %v2403_v9, 110  ;;  %vm1434_vm7 = vcmp.lt.s32.totalorder %v2403_v9, 96  ;;  %vm1672_vm8 = vcmp.lt.s32.totalorder %v2403_v9, 95  ;;  %vm1910_vm9 = vcmp.lt.s32.totalorder %v2403_v9, 94 }
   0xa   :  { %29 = vrot.lane.b32.xlu0 %v2362_v5, %s2301_s16  ;;  %474 = vrot.lane.b32.xlu1 %v2336_v0, %s2303_s23 }
   0xe   :  { %476 = vrot.lane.b32.xlu0 %v2348_v2, %s2303_s23  ;;  %472 = vrot.lane.b32.xlu1 %v2341_v1, %s2303_s23 }
  0x12   :  { %478 = vrot.lane.b32.xlu0 %v2353_v3, %s2303_s23  ;;  %480 = vrot.lane.b32.xlu1 %v2362_v5, %s2303_s23 }
  0x16   :  { %712 = vrot.lane.b32.xlu0 %v2336_v0, %s2304_s24  ;;  %714 = vrot.lane.b32.xlu1 %v2348_v2, %s2304_s24 }
  0x1a   :  { %710 = vrot.lane.b32.xlu0 %v2341_v1, %s2304_s24  ;;  %716 = vrot.lane.b32.xlu1 %v2353_v3, %s2304_s24 }
  0x1e   :  { %718 = vrot.lane.b32.xlu0 %v2362_v5, %s2304_s24  ;;  %950 = vrot.lane.b32.xlu1 %v2336_v0, %s2305_s2 }
  0x22   :  { %952 = vrot.lane.b32.xlu0 %v2348_v2, %s2305_s2  ;;  %948 = vrot.lane.b32.xlu1 %v2341_v1, %s2305_s2 }
  0x26   :  { %954 = vrot.lane.b32.xlu0 %v2353_v3, %s2305_s2  ;;  %956 = vrot.lane.b32.xlu1 %v2362_v5, %s2305_s2 }
  0x2a   :  { %1188 = vrot.lane.b32.xlu0 %v2336_v0, %s2306_s25  ;;  %1190 = vrot.lane.b32.xlu1 %v2348_v2, %s2306_s25 }
  0x2e   :  { %1186 = vrot.lane.b32.xlu0 %v2341_v1, %s2306_s25  ;;  %1192 = vrot.lane.b32.xlu1 %v2353_v3, %s2306_s25 }
  0x32   :  { %1194 = vrot.lane.b32.xlu0 %v2362_v5, %s2306_s25  ;;  %1426 = vrot.lane.b32.xlu1 %v2336_v0, %s2307_s26 }
  0x36   :  { %1428 = vrot.lane.b32.xlu0 %v2348_v2, %s2307_s26  ;;  %1424 = vrot.lane.b32.xlu1 %v2341_v1, %s2307_s26 }
  0x3a   :  { %1430 = vrot.lane.b32.xlu0 %v2353_v3, %s2307_s26  ;;  %1432 = vrot.lane.b32.xlu1 %v2362_v5, %s2307_s26 }
  0x3e   :  { %1664 = vrot.lane.b32.xlu0 %v2336_v0, %s2308_s27  ;;  %1666 = vrot.lane.b32.xlu1 %v2348_v2, %s2308_s27 }
  0x42   :  { %1662 = vrot.lane.b32.xlu0 %v2341_v1, %s2308_s27  ;;  %1668 = vrot.lane.b32.xlu1 %v2353_v3, %s2308_s27 }
  0x46   :  { %1670 = vrot.lane.b32.xlu0 %v2362_v5, %s2308_s27  ;;  %1902 = vrot.lane.b32.xlu1 %v2336_v0, %s2310_s28 }
  0x4a   :  { %1904 = vrot.lane.b32.xlu0 %v2348_v2, %s2310_s28  ;;  %1900 = vrot.lane.b32.xlu1 %v2341_v1, %s2310_s28 }
  0x4e   :  { %1906 = vrot.lane.b32.xlu0 %v2353_v3, %s2310_s28  ;;  %1908 = vrot.lane.b32.xlu1 %v2362_v5, %s2310_s28 }
  0x52   :  { %2141 = vperm.xlu0 %2278, %v2138_v7  }
  0x74   :  { %v24_v10 = vpop.permute.xlu0 %23  ;;  %v22_v11 = vpop.permute.xlu1 %21 }
  0x75   :  { %v37_v16 = vsel %vm33_vm0, %v22_v11, %v24_v10 }
  0x78   :  { %v26_v12 = vpop.permute.xlu0 %25  ;;  %v28_v13 = vpop.permute.xlu1 %27 }
  0x79   :  { %v36_v14 = vsel %vm33_vm0, %v24_v10, %v26_v12  ;;  %v35_v21 = vsel %vm33_vm0, %v26_v12, %v28_v13 }
  0x7a   :  { %75 = vmatprep.subr.mxu0 %v36_v14 }
  0x7b   :  { %76 = vmatpush1.msra.mxu0 %v37_v16 }
  0x7c   :  { %v30_v17 = vpop.permute.xlu0 %29  ;;  %2169 = vmatmul.mubr.msk.f32.vlgmr.msra.gmra.mxu0 %vm41_vm1, %v2168_v15  ;;  %v475_v18 = vpop.permute.xlu1 %474  ;;  %2221 = vmatprep.subr.mxu0 %v2302_v4 }
  0x7d   :  { %v38_v19 = vsel %vm33_vm0, %v30_v17, %v22_v11  ;;  %v34_v20 = vsel %vm33_vm0, %v28_v13, %v30_v17  ;;  %2223 = vmatprep.mubr.msk.f32.mxu0 %vm2311_vm2, %v2302_v4 }
  0x7e   :  { %146 = vmatprep.subr.mxu1 %v34_v20  ;;  %2222 = vmatpush3.msra.mxu0 %v38_v19  ;;  %v2195_v20 = vld [vmem:[%s2598_s0 + $0x38] sm:$0xff] }
  0x7f   :  { %147 = vmatpush1.msra.mxu1 %v35_v21  ;;  %361 = vmatprep.subr.mxu0 %v2353_v3 }
  0x80   :  { %v477_v22 = vpop.permute.xlu0 %476  ;;  %2170 = vmatmul.mubr.msk.f32.vlgmr.msra.gmra.mxu1 %vm41_vm1, %v2168_v15  ;;  %2224 = vmatmul.mubr.msk.f32.vlgmr.msra.gmra.mxu0 %vm41_vm1, %v2168_v15  ;;  %v473_v23 = vpop.permute.xlu1 %472 }
  0x81   :  { %362 = vmatpush1.msra.mxu0 %v2348_v2  ;;  %290 = vmatprep.subr.mxu1 %v2336_v0  ;;  %v485_v24 = vsel %vm482_vm3, %v475_v18, %v477_v22  ;;  %v486_v26 = vsel %vm482_vm3, %v473_v23, %v475_v18 }
  0x82   :  { %523 = vmatprep.subr.mxu0 %v485_v24  ;;  %291 = vmatpush1.msra.mxu1 %v2341_v1 }
  0x83   :  { %324 = vmatprep.mubr.f32.mxu1 %v2302_v4  ;;  %395 = vmatprep.mubr.f32.mxu0 %v2302_v4 }
  0x84   :  { %v479_v27 = vpop.permute.xlu0 %478  ;;  %2172 = vmatmul.mubr.msk.f32.vlgmr.msra.gmra.mxu1 %vm41_vm1, %v20_v25  ;;  %2173 = vmatmul.mubr.msk.f32.vlgmr.msra.gmra.mxu0 %vm41_vm1, %v20_v25  ;;  %v481_v28 = vpop.permute.xlu1 %480 }
  0x85   :  { %2226 = vmatprep.subr.mxu1 %v2302_v4  ;;  %524 = vmatpush1.msra.mxu0 %v486_v26  ;;  %v483_v29 = vsel %vm482_vm3, %v479_v27, %v481_v28  ;;  %v484_v31 = vsel %vm482_vm3, %v477_v22, %v479_v27  ;;  %v487_v34 = vsel %vm482_vm3, %v481_v28, %v473_v23 }
  0x86   :  { %2227 = vmatpush3.msra.mxu1 %v2362_v5  ;;  %2228 = vmatprep.mubr.msk.f32.mxu1 %vm2311_vm2, %v2302_v4 }
  0x87   :  { %594 = vmatprep.subr.mxu1 %v483_v29  ;;  %557 = vmatprep.mubr.f32.mxu0 %v2302_v4 }
  0x88   :  { %2231 = vmatprep.subr.mxu0 %v2302_v4  ;;  %v713_v32 = vpop.permute.xlu0 %712  ;;  %2229 = vmatmul.mubr.msk.f32.vlgmr.msra.gmra.mxu1 %vm41_vm1, %v20_v25  ;;  %v715_v33 = vpop.permute.xlu1 %714 }
  0x89   :  { %2176 = vmatmul.mubr.msk.f32.vlgmr.msra.gmra.mxu0 %vm41_vm1, %v2175_v30  ;;  %595 = vmatpush1.msra.mxu1 %v484_v31  ;;  %v723_v35 = vsel %vm720_vm4, %v713_v32, %v715_v33  ;;  %v2199_v31 = vld [vmem:[%s2598_s0 + $0x40] sm:$0xff]  ;;  %s2312_s0 = smov [#allocation2]  }
  0x8a   :  { %2232 = vmatpush3.msra.mxu0 %v487_v34  ;;  %761 = vmatprep.subr.mxu1 %v723_v35  ;;  %s2160_s21 = sshll.u32 %s2312_s0, 4  ;;  %s2161_s21 = int_to_ptr.vmem [resolvable:$true] %s2160_s21 }
  0x8b   :  { %628 = vmatprep.mubr.f32.mxu1 %v2302_v4  ;;  %2233 = vmatprep.mubr.msk.f32.mxu0 %vm2311_vm2, %v2302_v4  ;;  %s2279_s22 = scalar_lea.vmem %s2161_s21, 640  ;;  %p2284_p1 = scmp.lt.s32.totalorder %s2161_s21, %s2161_s21 }
  0x8c   :  { %v711_v36 = vpop.permute.xlu0 %710  ;;  %v717_v37 = vpop.permute.xlu1 %716  ;;  %2177 = vmatmul.mubr.msk.f32.vlgmr.msra.gmra.mxu1 %vm41_vm1, %v2175_v30  ;;  %p2280_p0 = scmp.ne.s32.totalorder %s2161_s21, %s2279_s22  ;;  %p2285_p2 = scmp.lt.s32.totalorder %s2279_s22, %s2279_s22 }
  0x8d   :  { %v724_v38 = vsel %vm720_vm4, %v711_v36, %v713_v32  ;;  %2234 = vmatmul.mubr.msk.f32.vlgmr.msra.gmra.mxu0 %vm41_vm1, %v2175_v30  ;;  %795 = vmatprep.mubr.f32.mxu1 %v2302_v4  ;;  %v722_v44 = vsel %vm720_vm4, %v715_v33, %v717_v37 }
  0x8e   :  { %762 = vmatpush1.msra.mxu1 %v724_v38  ;;  %866 = vmatprep.mubr.f32.mxu0 %v2302_v4  ;;  %p2286_p3 = por %p2285_p2, %p2284_p1 }
  0x8f   :  { %2236 = vmatprep.subr.mxu1 %v2302_v4 }
  0x90   :  { %v719_v40 = vpop.permute.xlu0 %718  ;;  %v951_v41 = vpop.permute.xlu1 %950  ;;  %2180 = vmatmul.mubr.msk.f32.vlgmr.msra.gmra.mxu1 %vm41_vm1, %v2179_v39  ;;  %p2287_p4 = pnand %p2286_p3, %p2280_p0 }
  0x91   :  { %v725_v42 = vsel %vm720_vm4, %v719_v40, %v711_v36  ;;  %v721_v43 = vsel %vm720_vm4, %v717_v37, %v719_v40  ;;  %2238 = vmatprep.mubr.msk.f32.mxu1 %vm2311_vm2, %v2302_v4 }
  0x92   :  { %832 = vmatprep.subr.mxu0 %v721_v43  ;;  %2237 = vmatpush3.msra.mxu1 %v725_v42 }
  0x93   :  { %833 = vmatpush1.msra.mxu0 %v722_v44 }
  0x94   :  { %v953_v45 = vpop.permute.xlu0 %952  ;;  %v949_v46 = vpop.permute.xlu1 %948  ;;  %2181 = vmatmul.mubr.msk.f32.vlgmr.msra.gmra.mxu0 %vm41_vm1, %v2179_v39  ;;  %2239 = vmatmul.mubr.msk.f32.vlgmr.msra.gmra.mxu1 %vm41_vm1, %v2179_v39 }
  0x95   :  { %v962_v47 = vsel %vm958_vm5, %v949_v46, %v951_v41  ;;  %v961_v48 = vsel %vm958_vm5, %v951_v41, %v953_v45  ;;  %1033 = vmatprep.mubr.f32.mxu0 %v2302_v4  ;;  %1104 = vmatprep.mubr.f32.mxu1 %v2302_v4 }
  0x96   :  { %999 = vmatprep.subr.mxu0 %v961_v48 }
  0x97   :  { %1000 = vmatpush1.msra.mxu0 %v962_v47 }
  0x98   :  { %v955_v50 = vpop.permute.xlu0 %954  ;;  %v957_v51 = vpop.permute.xlu1 %956  ;;  %2184 = vmatmul.mubr.msk.f32.vlgmr.msra.gmra.mxu0 %vm41_vm1, %v2183_v49  ;;  %2241 = vmatprep.subr.mxu0 %v2302_v4 }
  0x99   :  { %v960_v52 = vsel %vm958_vm5, %v953_v45, %v955_v50  ;;  %v963_v53 = vsel %vm958_vm5, %v957_v51, %v949_v46  ;;  %v959_v54 = vsel %vm958_vm5, %v955_v50, %v957_v51  ;;  %2243 = vmatprep.mubr.msk.f32.mxu0 %vm2311_vm2, %v2302_v4 }
  0x9a   :  { %1070 = vmatprep.subr.mxu1 %v959_v54  ;;  %2242 = vmatpush3.msra.mxu0 %v963_v53 }
  0x9b   :  { %1071 = vmatpush1.msra.mxu1 %v960_v52 }
  0x9c   :  { %v1189_v55 = vpop.permute.xlu0 %1188  ;;  %2185 = vmatmul.mubr.msk.f32.vlgmr.msra.gmra.mxu1 %vm41_vm1, %v2183_v49  ;;  %v1191_v56 = vpop.permute.xlu1 %1190  ;;  %2244 = vmatmul.mubr.msk.f32.vlgmr.msra.gmra.mxu0 %vm41_vm1, %v2183_v49 }
  0x9d   :  { %v1199_v57 = vsel %vm1196_vm6, %v1189_v55, %v1191_v56  ;;  %1271 = vmatprep.mubr.f32.mxu1 %v2302_v4  ;;  %1342 = vmatprep.mubr.f32.mxu0 %v2302_v4 }
  0x9e   :  { %1237 = vmatprep.subr.mxu1 %v1199_v57 }
  0xa0   :  { %v1187_v58 = vpop.permute.xlu0 %1186  ;;  %v1193_v59 = vpop.permute.xlu1 %1192 }
  0xa1   :  { %v1200_v61 = vsel %vm1196_vm6, %v1187_v58, %v1189_v55  ;;  %v1198_v2 = vsel %vm1196_vm6, %v1191_v56, %v1193_v59 }
  0xa2   :  { %1238 = vmatpush1.msra.mxu1 %v1200_v61 }
  0xa3   :  { %2188 = vmatmul.mubr.msk.f32.vlgmr.msra.gmra.mxu1 %vm41_vm1, %v2187_v60  ;;  %2246 = vmatprep.subr.mxu1 %v2302_v4 }
  0xa4   :  { %v1195_v62 = vpop.permute.xlu0 %1194  ;;  %v1427_v63 = vpop.permute.xlu1 %1426  ;;  %2248 = vmatprep.mubr.msk.f32.mxu1 %vm2311_vm2, %v2302_v4 }
  0xa5   :  { %v1201_v0 = vsel %vm1196_vm6, %v1195_v62, %v1187_v58  ;;  %v1197_v1 = vsel %vm1196_vm6, %v1193_v59, %v1195_v62 }
  0xa6   :  { %1308 = vmatprep.subr.mxu0 %v1197_v1  ;;  %2247 = vmatpush3.msra.mxu1 %v1201_v0 }
  0xa7   :  { %1309 = vmatpush1.msra.mxu0 %v1198_v2  ;;  %2249 = vmatmul.mubr.msk.f32.vlgmr.msra.gmra.mxu1 %vm41_vm1, %v2187_v60 }
  0xa8   :  { %v1429_v3 = vpop.permute.xlu0 %1428  ;;  %2189 = vmatmul.mubr.msk.f32.vlgmr.msra.gmra.mxu0 %vm41_vm1, %v2187_v60  ;;  %v1425_v5 = vpop.permute.xlu1 %1424  ;;  %1580 = vmatprep.mubr.f32.mxu1 %v2302_v4 }
  0xa9   :  { %v1438_v6 = vsel %vm1434_vm7, %v1425_v5, %v1427_v63  ;;  %v1437_v7 = vsel %vm1434_vm7, %v1427_v63, %v1429_v3  ;;  %1509 = vmatprep.mubr.f32.mxu0 %v2302_v4 }
  0xaa   :  { %1475 = vmatprep.subr.mxu0 %v1437_v7 }
  0xab   :  { %1476 = vmatpush1.msra.mxu0 %v1438_v6 }
  0xac   :  { %v1431_v10 = vpop.permute.xlu0 %1430  ;;  %2192 = vmatmul.mubr.msk.f32.vlgmr.msra.gmra.mxu0 %vm41_vm1, %v2191_v8  ;;  %v1433_v11 = vpop.permute.xlu1 %1432  ;;  %2251 = vmatprep.subr.mxu0 %v2302_v4 }
  0xad   :  { %v1436_v12 = vsel %vm1434_vm7, %v1429_v3, %v1431_v10  ;;  %v1439_v13 = vsel %vm1434_vm7, %v1433_v11, %v1425_v5  ;;  %v1435_v14 = vsel %vm1434_vm7, %v1431_v10, %v1433_v11  ;;  %2253 = vmatprep.mubr.msk.f32.mxu0 %vm2311_vm2, %v2302_v4 }
  0xae   :  { %1546 = vmatprep.subr.mxu1 %v1435_v14  ;;  %2252 = vmatpush3.msra.mxu0 %v1439_v13 }
  0xaf   :  { %1547 = vmatpush1.msra.mxu1 %v1436_v12 }
  0xb0   :  { %v1665_v15 = vpop.permute.xlu0 %1664  ;;  %2193 = vmatmul.mubr.msk.f32.vlgmr.msra.gmra.mxu1 %vm41_vm1, %v2191_v8  ;;  %2254 = vmatmul.mubr.msk.f32.vlgmr.msra.gmra.mxu0 %vm41_vm1, %v2191_v8  ;;  %v1667_v16 = vpop.permute.xlu1 %1666 }
  0xb1   :  { %v1675_v17 = vsel %vm1672_vm8, %v1665_v15, %v1667_v16  ;;  %1747 = vmatprep.mubr.f32.mxu1 %v2302_v4  ;;  %1818 = vmatprep.mubr.f32.mxu0 %v2302_v4 }
  0xb2   :  { %1713 = vmatprep.subr.mxu1 %v1675_v17 }
  0xb4   :  { %v1663_v18 = vpop.permute.xlu0 %1662  ;;  %v1669_v19 = vpop.permute.xlu1 %1668 }
  0xb5   :  { %v1676_v21 = vsel %vm1672_vm8, %v1663_v18, %v1665_v15  ;;  %v1674_v26 = vsel %vm1672_vm8, %v1667_v16, %v1669_v19 }
  0xb6   :  { %1714 = vmatpush1.msra.mxu1 %v1676_v21 }
  0xb7   :  { %2196 = vmatmul.mubr.msk.f32.vlgmr.msra.gmra.mxu1 %vm41_vm1, %v2195_v20  ;;  %2256 = vmatprep.subr.mxu1 %v2302_v4 }
  0xb8   :  { %v1671_v22 = vpop.permute.xlu0 %1670  ;;  %v1903_v23 = vpop.permute.xlu1 %1902  ;;  %2258 = vmatprep.mubr.msk.f32.mxu1 %vm2311_vm2, %v2302_v4 }
  0xb9   :  { %v1677_v24 = vsel %vm1672_vm8, %v1671_v22, %v1663_v18  ;;  %v1673_v25 = vsel %vm1672_vm8, %v1669_v19, %v1671_v22 }
  0xba   :  { %1784 = vmatprep.subr.mxu0 %v1673_v25  ;;  %2257 = vmatpush3.msra.mxu1 %v1677_v24 }
  0xbb   :  { %1785 = vmatpush1.msra.mxu0 %v1674_v26  ;;  %2259 = vmatmul.mubr.msk.f32.vlgmr.msra.gmra.mxu1 %vm41_vm1, %v2195_v20 }
  0xbc   :  { %v1905_v27 = vpop.permute.xlu0 %1904  ;;  %2197 = vmatmul.mubr.msk.f32.vlgmr.msra.gmra.mxu0 %vm41_vm1, %v2195_v20  ;;  %v1901_v28 = vpop.permute.xlu1 %1900  ;;  %2056 = vmatprep.mubr.f32.mxu1 %v2302_v4 }
  0xbd   :  { %v1914_v29 = vsel %vm1910_vm9, %v1901_v28, %v1903_v23  ;;  %v1913_v30 = vsel %vm1910_vm9, %v1903_v23, %v1905_v27  ;;  %1985 = vmatprep.mubr.f32.mxu0 %v2302_v4 }
  0xbe   :  { %1951 = vmatprep.subr.mxu0 %v1913_v30 }
  0xbf   :  { %1952 = vmatpush1.msra.mxu0 %v1914_v29 }
  0xc0   :  { %v1907_v32 = vpop.permute.xlu0 %1906  ;;  %2200 = vmatmul.mubr.msk.f32.vlgmr.msra.gmra.mxu0 %vm41_vm1, %v2199_v31  ;;  %v1909_v33 = vpop.permute.xlu1 %1908  ;;  %2261 = vmatprep.subr.mxu0 %v2302_v4 }
  0xc1   :  { %v1912_v34 = vsel %vm1910_vm9, %v1905_v27, %v1907_v32  ;;  %v1915_v35 = vsel %vm1910_vm9, %v1909_v33, %v1901_v28  ;;  %v1911_v36 = vsel %vm1910_vm9, %v1907_v32, %v1909_v33  ;;  %2263 = vmatprep.mubr.msk.f32.mxu0 %vm2311_vm2, %v2302_v4 }
  0xc2   :  { %2022 = vmatprep.subr.mxu1 %v1911_v36  ;;  %2262 = vmatpush3.msra.mxu0 %v1915_v35 }
  0xc3   :  { %2023 = vmatpush1.msra.mxu1 %v1912_v34 }
  0xc4   :  { %2201 = vmatmul.mubr.msk.f32.vlgmr.msra.gmra.mxu1 %vm41_vm1, %v2199_v31  ;;  %2264 = vmatmul.mubr.msk.f32.vlgmr.msra.gmra.mxu0 %vm41_vm1, %v2199_v31 }
 0x13c   :  { %v111_v37 = vpop.f32.mrf.mxu0 }
 0x13e   :  { %v113_v38 = vpop.f32.mrf.mxu0 }
 0x140   :  { %v182_v39 = vpop.f32.mrf.mxu1  ;;  %v253_v40 = vpop.f32.mrf.mxu0 }
 0x142   :  { %v184_v41 = vpop.f32.mrf.mxu1  ;;  %v2225_v42 = vpop.f32.mrf.mxu0 }
 0x144   :  { %v326_v43 = vpop.f32.mrf.mxu1  ;;  %v397_v44 = vpop.f32.mrf.mxu0 }
 0x145   :  { %v327_v10 = vadd.f32 %v326_v43, %v111_v37  ;;  %v398_v18 = vadd.f32 %v397_v44, %v182_v39 }
 0x146   :  { %v328_v9 = vpop.f32.mrf.mxu1  ;;  %v399_v45 = vpop.f32.mrf.mxu0 }
 0x147   :  { %v329_v13 = vadd.f32 %v328_v9, %v113_v38  ;;  %v400_v19 = vadd.f32 %v399_v45, %v184_v41 }
 0x148   :  { %v468_v46 = vpop.f32.mrf.mxu1 }
 0x149   :  { %v559_v47 = vpop.f32.mrf.mxu0  ;;  %v469_v14 = vadd.f32 %v468_v46, %v253_v40 }
 0x14a   :  { %v2230_v4 = vpop.f32.mrf.mxu1  ;;  %v705_v15 = vadd.f32 %v559_v47, %v327_v10 }
 0x14b   :  { %v561_v48 = vpop.f32.mrf.mxu0 }
 0x14c   :  { %v630_v49 = vpop.f32.mrf.mxu1  ;;  %v706_v20 = vadd.f32 %v561_v48, %v329_v13  ;;  %v2142_v48 = vpop.permute.xlu0 %2141 }
 0x14d   :  { %v701_v50 = vpop.f32.mrf.mxu0  ;;  %v707_v24 = vadd.f32 %v630_v49, %v398_v18 }
 0x14e   :  { %v632_v51 = vpop.f32.mrf.mxu1  ;;  %v709_v21 = vadd.f32 %v701_v50, %v469_v14 }
 0x14f   :  { %v2235_v52 = vpop.f32.mrf.mxu0  ;;  %v708_v26 = vadd.f32 %v632_v51, %v400_v19 }
 0x150   :  { %v797_v53 = vpop.f32.mrf.mxu1 }
 0x151   :  { %v943_v22 = vadd.f32 %v797_v53, %v705_v15 }
 0x152   :  { %v799_v54 = vpop.f32.mrf.mxu1 }
 0x153   :  { %v944_v27 = vadd.f32 %v799_v54, %v706_v20 }
 0x154   :  { %v868_v55 = vpop.f32.mrf.mxu0  ;;  %v939_v56 = vpop.f32.mrf.mxu1 }
 0x155   :  { %v947_v28 = vadd.f32 %v939_v56, %v709_v21  ;;  %v945_v31 = vadd.f32 %v868_v55, %v707_v24 }
 0x156   :  { %v870_v57 = vpop.f32.mrf.mxu0  ;;  %v2240_v58 = vpop.f32.mrf.mxu1 }
 0x157   :  { %v946_v35 = vadd.f32 %v870_v57, %v708_v26 }
 0x158   :  { %v1035_v59 = vpop.f32.mrf.mxu0 }
 0x159   :  { %v1181_v29 = vadd.f32 %v1035_v59, %v943_v22 }
 0x15a   :  { %v1037_v60 = vpop.f32.mrf.mxu0 }
 0x15b   :  { %v1182_v32 = vadd.f32 %v1037_v60, %v944_v27 }
 0x15c   :  { %v1177_v61 = vpop.f32.mrf.mxu0  ;;  %v1106_v62 = vpop.f32.mrf.mxu1 }
 0x15d   :  { %v1183_v37 = vadd.f32 %v1106_v62, %v945_v31  ;;  %v1185_v38 = vadd.f32 %v1177_v61, %v947_v28 }
 0x15e   :  { %v2245_v63 = vpop.f32.mrf.mxu0  ;;  %v1108_v0 = vpop.f32.mrf.mxu1 }
 0x15f   :  { %v1184_v42 = vadd.f32 %v1108_v0, %v946_v35 }
 0x163   :  { %v1273_v1 = vpop.f32.mrf.mxu1 }
 0x164   :  { %v1419_v33 = vadd.f32 %v1273_v1, %v1181_v29 }
 0x165   :  { %v1275_v2 = vpop.f32.mrf.mxu1 }
 0x166   :  { %v1420_v39 = vadd.f32 %v1275_v2, %v1182_v32 }
 0x167   :  { %v1415_v3 = vpop.f32.mrf.mxu1 }
 0x168   :  { %v1344_v5 = vpop.f32.mrf.mxu0  ;;  %v1423_v44 = vadd.f32 %v1415_v3, %v1185_v38 }
 0x169   :  { %v2250_v6 = vpop.f32.mrf.mxu1  ;;  %v1421_v9 = vadd.f32 %v1344_v5, %v1183_v37 }
 0x16a   :  { %v1346_v7 = vpop.f32.mrf.mxu0 }
 0x16b   :  { %v1422_v47 = vadd.f32 %v1346_v7, %v1184_v42 }
 0x16c   :  { %v1511_v8 = vpop.f32.mrf.mxu0 }
 0x16d   :  { %v1657_v40 = vadd.f32 %v1511_v8, %v1419_v33 }
 0x16e   :  { %v1513_v11 = vpop.f32.mrf.mxu0 }
 0x16f   :  { %v1658_v45 = vadd.f32 %v1513_v11, %v1420_v39 }
 0x170   :  { %v1653_v12 = vpop.f32.mrf.mxu0  ;;  %v1582_v16 = vpop.f32.mrf.mxu1 }
 0x171   :  { %v1659_v49 = vadd.f32 %v1582_v16, %v1421_v9  ;;  %v1661_v50 = vadd.f32 %v1653_v12, %v1423_v44 }
 0x172   :  { %v2255_v17 = vpop.f32.mrf.mxu0  ;;  %v1584_v23 = vpop.f32.mrf.mxu1 }
 0x173   :  { %v1660_v53 = vadd.f32 %v1584_v23, %v1422_v47 }
 0x177   :  { %v1749_v25 = vpop.f32.mrf.mxu1 }
 0x178   :  { %v1895_v46 = vadd.f32 %v1749_v25, %v1657_v40 }
 0x179   :  { %v1751_v30 = vpop.f32.mrf.mxu1 }
 0x17a   :  { %v1896_v51 = vadd.f32 %v1751_v30, %v1658_v45 }
 0x17b   :  { %v1891_v34 = vpop.f32.mrf.mxu1 }
 0x17c   :  { %v1820_v36 = vpop.f32.mrf.mxu0  ;;  %v1899_v55 = vadd.f32 %v1891_v34, %v1661_v50 }
 0x17d   :  { %v2260_v41 = vpop.f32.mrf.mxu1  ;;  %v1897_v56 = vadd.f32 %v1820_v36, %v1659_v49 }
 0x17e   :  { %v1822_v43 = vpop.f32.mrf.mxu0 }
 0x17f   :  { %v1898_v61 = vadd.f32 %v1822_v43, %v1660_v53 }
 0x180   :  { %v1987_v4 = vpop.f32.mrf.mxu0 }
 0x181   :  { %v2133_v52 = vadd.f32 %v1987_v4, %v1895_v46 }
 0x182   :  { %v1989_v54 = vpop.f32.mrf.mxu0 }
 0x183   :  { %v2144_v57 = vadd.f32 %v2142_v48, %v2133_v52  ;;  %v2134_v58 = vadd.f32 %v1989_v54, %v1896_v51 }
 0x184   :  { %v2058_v59 = vpop.f32.mrf.mxu1  ;;  %v2129_v60 = vpop.f32.mrf.mxu0 }
 0x185   :  { %2149 = vst [vmem:[#allocation2] sm:$0xff] %v2144_v57  ;;  %v2145_v62 = vadd.f32 %v2142_v48, %v2134_v58  ;;  %v2135_v63 = vadd.f32 %v2058_v59, %v1897_v56  ;;  %v2137_v0 = vadd.f32 %v2129_v60, %v1899_v55 }
 0x186   :  { %v2060_v1 = vpop.f32.mrf.mxu1  ;;  %v2265_v2 = vpop.f32.mrf.mxu0 }
 0x187   :  { %2150 = vst [vmem:[#allocation2 + $0x8] sm:$0xff] %v2145_v62  ;;  %v2146_v3 = vadd.f32 %v2142_v48, %v2135_v63  ;;  %v2148_v5 = vadd.f32 %v2142_v48, %v2137_v0  ;;  %v2136_v6 = vadd.f32 %v2060_v1, %v1898_v61 }
 0x189   :  { %2151 = vst [vmem:[#allocation2 + $0x10] sm:$0xff] %v2146_v3  ;;  %2153 = vst [vmem:[#allocation2 + $0x20] sm:$0xff] %v2148_v5  ;;  %v2147_v7 = vadd.f32 %v2142_v48, %v2136_v6 }
 0x18b   :  { %2152 = vst [vmem:[#allocation2 + $0x18] sm:$0xff] %v2147_v7 }
 0x18c   :  { %2290 = shalt.err (!%p2287_p4)
}
 0x18d   :  { %2163 = dma.vmem_to_hbm [thread:$0]  %s2161_s21, 640, %s2601_s3, [#allocation3]  }
 0x18e   :  { %2299 = dma.done.wait [#allocation3], 640  }
 0x18f   :  { %2300 = vsyncadd [#allocation3], 4294966656 }
 0x190   :  { %2167 = vsyncpa [#allocation3], 1 }

</bundles_post_ra>
